<compile_context>
chip_gen: v7x
topology: tpu7x:2x2x1
jax: 0.10.0
libtpu: 0.0.40
codegen_flags: <defaults>
</compile_context>

<pallas_src>
import functools

import jax
import jax.numpy as jnp
from jax.experimental import pallas as pl
from jax.experimental.pallas import tpu as pltpu

_LANE = 128
_SUBLANE = 8
_BN_EPS = 1e-5
# Conservative VMEM budget for the fully-resident path (leave headroom for
# double-buffer-free residency on v7x's 64 MiB VMEM / 32 MiB default scope).
_RESIDENT_VMEM_BUDGET = 24 * 1024 * 1024


def _round_up(n, m):
    return ((n + m - 1) // m) * m


# ---------------------------------------------------------------------------
# Resident kernel: single invocation, whole weight stack in VMEM, layer loop
# unrolled in-kernel.  This is the fast path for small/medium F.
# ---------------------------------------------------------------------------
def _tunnel_kernel_resident(x_ref, w_ref, gb_ref, o_ref, *,
                            num_layers, num_nonlinear_layers):
    # x_ref : (B, F) f32   network input (padded)
    # w_ref : (L, F, F)    weight stack (compute dtype, e.g. bf16)
    # gb_ref: (L, 2, F) f32  row 0 = gamma, row 1 = beta (per layer)
    # o_ref : (L, B, F) f32  per-layer activation slab (slab[L-1] = fc output)
    x = x_ref[...]                                          # (B, F) f32
    for l in range(num_layers + 1):
        w = w_ref[l]                                        # (F, F)
        y = jnp.dot(x.astype(w.dtype), w,
                    preferred_element_type=jnp.float32)     # (B, F) f32
        if l < num_nonlinear_layers:
            gb = gb_ref[l]                                  # (2, F) f32
            mean = jnp.mean(y, axis=0, keepdims=True)
            centered = y - mean
            var = jnp.mean(centered * centered, axis=0, keepdims=True)
            # Fold gamma into the rsqrt scale (saves a full-tile vmul).
            scale = jax.lax.rsqrt(var + _BN_EPS) * gb[0:1, :]
            y = jnp.maximum(centered * scale + gb[1:2, :], 0.0)
        o_ref[l] = y.astype(o_ref.dtype)
        x = y                                               # carry (in vregs)


def _forward_resident(x_pad, w_stack, gb_stack, *,
                      num_layers, num_nonlinear_layers):
    L, F, _ = w_stack.shape
    B = x_pad.shape[0]
    kernel = functools.partial(_tunnel_kernel_resident,
                               num_layers=num_layers,
                               num_nonlinear_layers=num_nonlinear_layers)
    return pl.pallas_call(
        kernel,
        out_shape=jax.ShapeDtypeStruct((L, B, F), jnp.float32),
        in_specs=[
            pl.BlockSpec(memory_space=pltpu.MemorySpace.VMEM),   # x (whole)
            pl.BlockSpec(memory_space=pltpu.MemorySpace.VMEM),   # w stack
            pl.BlockSpec(memory_space=pltpu.MemorySpace.VMEM),   # gamma/beta
        ],
        out_specs=pl.BlockSpec(memory_space=pltpu.MemorySpace.VMEM),
    )(x_pad, w_stack, gb_stack)


# ---------------------------------------------------------------------------
# Streamed fallback: one grid step per Linear (last step = fc head), weight
# tile streamed/double-buffered, activation carried in VMEM scratch.  Used
# when the whole stack would not fit comfortably in VMEM (large hidden_dim).
# ---------------------------------------------------------------------------
def _tunnel_kernel_streamed(x_ref, w_ref, gb_ref, o_ref, x_scr, *,
                            num_layers, num_nonlinear_layers):
    l = pl.program_id(0)

    @pl.when(l == 0)
    def _():
        x_scr[...] = x_ref[...]

    w = w_ref[0]                                            # (F, F)
    y = jnp.dot(x_scr[...].astype(w.dtype), w,
                preferred_element_type=jnp.float32)         # (B, F) f32

    @pl.when(l < num_nonlinear_layers)
    def _():
        gb = gb_ref[0]                                      # (2, F)
        mean = jnp.mean(y, axis=0, keepdims=True)
        centered = y - mean
        var = jnp.mean(centered * centered, axis=0, keepdims=True)
        scale = jax.lax.rsqrt(var + _BN_EPS) * gb[0:1, :]
        act = jnp.maximum(centered * scale + gb[1:2, :], 0.0)
        x_scr[...] = act
        o_ref[0] = act.astype(o_ref.dtype)

    @pl.when(l >= num_nonlinear_layers)
    def _():
        o_ref[0] = y.astype(o_ref.dtype)

    # Carry for subsequent pure-linear layers; dead on the final fc step.
    @pl.when(jnp.logical_and(l >= num_nonlinear_layers, l < num_layers))
    def _():
        x_scr[...] = y


def _forward_streamed(x_pad, w_stack, gb_stack, *,
                      num_layers, num_nonlinear_layers):
    L, F, _ = w_stack.shape
    B = x_pad.shape[0]
    kernel = functools.partial(_tunnel_kernel_streamed,
                               num_layers=num_layers,
                               num_nonlinear_layers=num_nonlinear_layers)
    # TODO(synk): for F >~ 2048 (f32) the (F, F) weight tile should be N-tiled
    # via a second grid axis (and a batch-parallel axis added for v7x's 2 TCs).
    return pl.pallas_call(
        kernel,
        out_shape=jax.ShapeDtypeStruct((L, B, F), jnp.float32),
        grid_spec=pltpu.PrefetchScalarGridSpec(
            num_scalar_prefetch=0,
            grid=(L,),
            in_specs=[
                pl.BlockSpec((B, F), lambda l: (0, 0)),        # input (step 0)
                pl.BlockSpec((1, F, F), lambda l: (l, 0, 0)),  # weight stream
                pl.BlockSpec((1, 2, F), lambda l: (l, 0, 0)),  # gamma/beta
            ],
            out_specs=pl.BlockSpec((1, B, F), lambda l: (l, 0, 0)),
            scratch_shapes=[pltpu.VMEM((B, F), jnp.float32)],
        ),
        compiler_params=pltpu.CompilerParams(
            dimension_semantics=("arbitrary",),
            vmem_limit_bytes=64 * 1024 * 1024,
        ),
    )(x_pad, w_stack, gb_stack)


def fused_tunnel_forward(x_pad, w_stack, gb_stack, *,
                         num_layers, num_nonlinear_layers):
    L, F, _ = w_stack.shape
    B = x_pad.shape[0]
    resident_bytes = (w_stack.size * w_stack.dtype.itemsize
                      + gb_stack.size * 4
                      + B * F * 4
                      + L * B * F * 4)
    if resident_bytes <= _RESIDENT_VMEM_BUDGET:
        return _forward_resident(x_pad, w_stack, gb_stack,
                                 num_layers=num_layers,
                                 num_nonlinear_layers=num_nonlinear_layers)
    return _forward_streamed(x_pad, w_stack, gb_stack,
                             num_layers=num_layers,
                             num_nonlinear_layers=num_nonlinear_layers)


# ---------------------------------------------------------------------------
# Parameter init ('default' PyTorch-style uniform, bias=False) and packing.
# ---------------------------------------------------------------------------
def init_tunnel_network(key, input_dim, hidden_dim, output_dim, num_layers,
                        num_nonlinear_layers):
    params = {"layers": [], "bn": [], "fc": None}
    num_linear_layers = num_layers - num_nonlinear_layers

    def _linear_init(k, fan_out, fan_in):
        bound = 1.0 / jnp.sqrt(jnp.float32(fan_in))
        # stored pre-transposed: (fan_in, fan_out) so the kernel does x @ W
        return jax.random.uniform(k, (fan_in, fan_out), jnp.float32,
                                  minval=-bound, maxval=bound)

    keys = jax.random.split(key, num_layers + 1)
    params["layers"].append(_linear_init(keys[0], hidden_dim, input_dim))
    params["bn"].append((jnp.ones((hidden_dim,), jnp.float32),
                         jnp.zeros((hidden_dim,), jnp.float32)))
    for i in range(1, num_nonlinear_layers):
        params["layers"].append(_linear_init(keys[i], hidden_dim, hidden_dim))
        params["bn"].append((jnp.ones((hidden_dim,), jnp.float32),
                             jnp.zeros((hidden_dim,), jnp.float32)))
    for i in range(num_linear_layers):
        params["layers"].append(
            _linear_init(keys[num_nonlinear_layers + i], hidden_dim, hidden_dim))
        params["bn"].append(None)
    params["fc"] = _linear_init(keys[num_layers], output_dim, hidden_dim)
    return params


def pack_params(params, input_dim, hidden_dim, output_dim, num_layers,
                num_nonlinear_layers, compute_dtype=jnp.bfloat16):
    """Zero-pad feature dims to lane-dense F=128k, stack per-layer arrays.

    Weights default to bf16 (native MXU rate, halved HBM traffic); BN params
    stay f32.  Padded columns use gamma=1 / beta=0 so they remain zero.
    """
    F = _round_up(max(input_dim, hidden_dim, output_dim), _LANE)
    L = num_layers + 1
    w_stack = jnp.zeros((L, F, F), compute_dtype)
    w_stack = w_stack.at[0, :input_dim, :hidden_dim].set(
        params["layers"][0].astype(compute_dtype))
    for i in range(1, num_layers):
        w_stack = w_stack.at[i, :hidden_dim, :hidden_dim].set(
            params["layers"][i].astype(compute_dtype))
    w_stack = w_stack.at[num_layers, :hidden_dim, :output_dim].set(
        params["fc"].astype(compute_dtype))
    # Merged gamma/beta stream: (L, 2, F); row 0 = gamma, row 1 = beta.
    gb_stack = jnp.concatenate(
        [jnp.ones((L, 1, F), jnp.float32), jnp.zeros((L, 1, F), jnp.float32)],
        axis=1)
    for i in range(num_nonlinear_layers):
        g, b = params["bn"][i]
        gb_stack = gb_stack.at[i, 0, :hidden_dim].set(g)
        gb_stack = gb_stack.at[i, 1, :hidden_dim].set(b)
    return w_stack, gb_stack


# ---------------------------------------------------------------------------
# Forward wrapper (single fused pallas_call, slab sliced back to real widths).
# ---------------------------------------------------------------------------
@functools.partial(jax.jit,
                   static_argnames=("input_dim", "hidden_dim", "output_dim",
                                    "num_layers", "num_nonlinear_layers"))
def tunnel_network_forward(packed, x, *, input_dim, hidden_dim, output_dim,
                           num_layers, num_nonlinear_layers):
    w_stack, gb_stack = packed
    B = x.shape[0]
    F = w_stack.shape[-1]
    # BN uses batch statistics; never pad along the batch axis.
    assert B % _SUBLANE == 0, "batch must be a multiple of 8"
    # Zero-pad the input features to the lane-dense width (tiny; XLA may fuse).
    x_pad = jnp.zeros((B, F), jnp.float32).at[:, :input_dim].set(
        x.astype(jnp.float32))
    slab = fused_tunnel_forward(x_pad, w_stack, gb_stack,
                                num_layers=num_layers,
                                num_nonlinear_layers=num_nonlinear_layers)
    out = slab[num_layers, :, :output_dim]
    # x.clone().detach() equivalent.
    out_list = [jax.lax.stop_gradient(slab[i, :, :hidden_dim])
                for i in range(num_layers)]
    return out, out_list
    # TODO(synk): BatchNorm running_mean/running_var buffers are not updated
    # (training-mode forward only, matching the reference call).


# ---------------------------------------------------------------------------
# Pure-JAX reference (f32, highest precision) for the correctness check.
# ---------------------------------------------------------------------------
def _reference_forward(params, x, num_nonlinear_layers):
    outs = []
    for i, w in enumerate(params["layers"]):
        x = jnp.dot(x, w, precision=jax.lax.Precision.HIGHEST)
        if i < num_nonlinear_layers:
            g, b = params["bn"][i]
            mean = jnp.mean(x, axis=0, keepdims=True)
            var = jnp.mean((x - mean) ** 2, axis=0, keepdims=True)
            x = (x - mean) * jax.lax.rsqrt(var + _BN_EPS) * g[None, :] + b[None, :]
            x = jnp.maximum(x, 0.0)
        outs.append(x)
    out = jnp.dot(x, params["fc"], precision=jax.lax.Precision.HIGHEST)
    return out, outs


# ---------------------------------------------------------------------------
if __name__ == "__main__":
    batch = 8
    input_dim = 16
    hidden_dim = 32
    output_dim = 8
    num_layers = 4
    num_nonlinear_layers = 2

    key = jax.random.PRNGKey(0)
    k_param, k_x = jax.random.split(key)

    params = init_tunnel_network(k_param, input_dim, hidden_dim, output_dim,
                                 num_layers, num_nonlinear_layers)
    packed = pack_params(params, input_dim, hidden_dim, output_dim,
                         num_layers, num_nonlinear_layers)
    x = jax.random.normal(k_x, (batch, input_dim), jnp.float32)

    out, out_list = tunnel_network_forward(
        packed, x,
        input_dim=input_dim, hidden_dim=hidden_dim, output_dim=output_dim,
        num_layers=num_layers, num_nonlinear_layers=num_nonlinear_layers)
    jax.block_until_ready(out)
    jax.block_until_ready(out_list)

    assert out.shape == (batch, output_dim)
    assert len(out_list) == num_layers
    assert all(o.shape == (batch, hidden_dim) for o in out_list)

    ref_out, ref_list = _reference_forward(params, x, num_nonlinear_layers)
    assert jnp.allclose(out, ref_out, rtol=5e-2, atol=5e-2)
    for a, r in zip(out_list, ref_list):
        assert jnp.allclose(a, r, rtol=5e-2, atol=5e-2)

    print("KERNEL_OK")
</pallas_src>

<mosaic_0001>
module attributes {stable_mosaic.version = 11 : i64} {
  func.func @_tunnel_kernel_resident(%arg0: memref<8x128xf32, #tpu.memory_space<vmem>>, %arg1: memref<5x128x128xbf16, #tpu.memory_space<vmem>>, %arg2: memref<5x2x128xf32, #tpu.memory_space<vmem>>, %arg3: memref<5x8x128xf32, #tpu.memory_space<vmem>>) attributes {dimension_semantics = [], scalar_prefetch = 0 : i64, scratch_operands = 0 : i64, tpu.core_type = #tpu.core_type<tc>} {
    %c0 = arith.constant 0 : index
    %c0_0 = arith.constant 0 : index
    %0 = vector.load %arg0[%c0, %c0_0] : memref<8x128xf32, #tpu.memory_space<vmem>>, vector<8x128xf32>
    %c0_1 = arith.constant 0 : index
    %c0_2 = arith.constant 0 : index
    %c0_3 = arith.constant 0 : index
    %1 = vector.load %arg1[%c0_1, %c0_2, %c0_3] : memref<5x128x128xbf16, #tpu.memory_space<vmem>>, vector<1x128x128xbf16>
    %2 = vector.shape_cast %1 : vector<1x128x128xbf16> to vector<128x128xbf16>
    %3 = arith.truncf %0 : vector<8x128xf32> to vector<8x128xbf16>
    %cst = arith.constant dense<0.000000e+00> : vector<8x128xf32>
    %4 = tpu.matmul %3, %2, %cst {dimension_numbers = #tpu.dot_dimension_numbers<[1], [0], [0], [1], [0, 0, 1, 1], [], []>} : vector<8x128xbf16>, vector<128x128xbf16>, vector<8x128xf32> -> vector<8x128xf32>
    %c0_4 = arith.constant 0 : index
    %c0_5 = arith.constant 0 : index
    %c0_6 = arith.constant 0 : index
    %5 = vector.load %arg2[%c0_4, %c0_5, %c0_6] : memref<5x2x128xf32, #tpu.memory_space<vmem>>, vector<1x2x128xf32>
    %6 = vector.shape_cast %5 : vector<1x2x128xf32> to vector<2x128xf32>
    %cst_7 = arith.constant dense<0.000000e+00> : vector<128xf32>
    %7 = vector.multi_reduction <add>, %4, %cst_7 [0] : vector<8x128xf32> to vector<128xf32>
    %8 = vector.shape_cast %7 : vector<128xf32> to vector<1x128xf32>
    %cst_8 = arith.constant 8.000000e+00 : f32
    %9 = vector.broadcast %cst_8 : f32 to vector<1x128xf32>
    %10 = arith.divf %8, %9 : vector<1x128xf32>
    %11 = vector.broadcast %10 : vector<1x128xf32> to vector<8x128xf32>
    %12 = arith.subf %4, %11 : vector<8x128xf32>
    %13 = arith.mulf %12, %12 : vector<8x128xf32>
    %cst_9 = arith.constant dense<0.000000e+00> : vector<128xf32>
    %14 = vector.multi_reduction <add>, %13, %cst_9 [0] : vector<8x128xf32> to vector<128xf32>
    %15 = vector.shape_cast %14 : vector<128xf32> to vector<1x128xf32>
    %cst_10 = arith.constant 8.000000e+00 : f32
    %16 = vector.broadcast %cst_10 : f32 to vector<1x128xf32>
    %17 = arith.divf %15, %16 : vector<1x128xf32>
    %cst_11 = arith.constant 9.99999974E-6 : f32
    %18 = vector.broadcast %cst_11 : f32 to vector<1x128xf32>
    %19 = arith.addf %17, %18 : vector<1x128xf32>
    %20 = math.rsqrt %19 : vector<1x128xf32>
    %21 = vector.extract_strided_slice %6 {offsets = [0, 0], sizes = [1, 128], strides = [1, 1]} : vector<2x128xf32> to vector<1x128xf32>
    %22 = arith.mulf %20, %21 : vector<1x128xf32>
    %23 = vector.broadcast %22 : vector<1x128xf32> to vector<8x128xf32>
    %24 = arith.mulf %12, %23 : vector<8x128xf32>
    %25 = vector.extract_strided_slice %6 {offsets = [1, 0], sizes = [1, 128], strides = [1, 1]} : vector<2x128xf32> to vector<1x128xf32>
    %26 = vector.broadcast %25 : vector<1x128xf32> to vector<8x128xf32>
    %27 = arith.addf %24, %26 : vector<8x128xf32>
    %cst_12 = arith.constant 0.000000e+00 : f32
    %28 = vector.broadcast %cst_12 : f32 to vector<8x128xf32>
    %29 = arith.maximumf %27, %28 : vector<8x128xf32>
    %c0_13 = arith.constant 0 : index
    %c0_14 = arith.constant 0 : index
    %c0_15 = arith.constant 0 : index
    %30 = vector.load %arg3[%c0_13, %c0_14, %c0_15] : memref<5x8x128xf32, #tpu.memory_space<vmem>>, vector<1x8x128xf32>
    %31 = vector.shape_cast %30 : vector<1x8x128xf32> to vector<8x128xf32>
    %32 = vector.shape_cast %29 : vector<8x128xf32> to vector<1x8x128xf32>
    tpu.vector_store %arg3[%c0_13, %c0_14, %c0_15], %32 {strides = array<i32>} : memref<5x8x128xf32, #tpu.memory_space<vmem>>, vector<1x8x128xf32>,
    %c1 = arith.constant 1 : index
    %c0_16 = arith.constant 0 : index
    %c0_17 = arith.constant 0 : index
    %33 = vector.load %arg1[%c1, %c0_16, %c0_17] : memref<5x128x128xbf16, #tpu.memory_space<vmem>>, vector<1x128x128xbf16>
    %34 = vector.shape_cast %33 : vector<1x128x128xbf16> to vector<128x128xbf16>
    %35 = arith.truncf %29 : vector<8x128xf32> to vector<8x128xbf16>
    %cst_18 = arith.constant dense<0.000000e+00> : vector<8x128xf32>
    %36 = tpu.matmul %35, %34, %cst_18 {dimension_numbers = #tpu.dot_dimension_numbers<[1], [0], [0], [1], [0, 0, 1, 1], [], []>} : vector<8x128xbf16>, vector<128x128xbf16>, vector<8x128xf32> -> vector<8x128xf32>
    %c1_19 = arith.constant 1 : index
    %c0_20 = arith.constant 0 : index
    %c0_21 = arith.constant 0 : index
    %37 = vector.load %arg2[%c1_19, %c0_20, %c0_21] : memref<5x2x128xf32, #tpu.memory_space<vmem>>, vector<1x2x128xf32>
    %38 = vector.shape_cast %37 : vector<1x2x128xf32> to vector<2x128xf32>
    %cst_22 = arith.constant dense<0.000000e+00> : vector<128xf32>
    %39 = vector.multi_reduction <add>, %36, %cst_22 [0] : vector<8x128xf32> to vector<128xf32>
    %40 = vector.shape_cast %39 : vector<128xf32> to vector<1x128xf32>
    %cst_23 = arith.constant 8.000000e+00 : f32
    %41 = vector.broadcast %cst_23 : f32 to vector<1x128xf32>
    %42 = arith.divf %40, %41 : vector<1x128xf32>
    %43 = vector.broadcast %42 : vector<1x128xf32> to vector<8x128xf32>
    %44 = arith.subf %36, %43 : vector<8x128xf32>
    %45 = arith.mulf %44, %44 : vector<8x128xf32>
    %cst_24 = arith.constant dense<0.000000e+00> : vector<128xf32>
    %46 = vector.multi_reduction <add>, %45, %cst_24 [0] : vector<8x128xf32> to vector<128xf32>
    %47 = vector.shape_cast %46 : vector<128xf32> to vector<1x128xf32>
    %cst_25 = arith.constant 8.000000e+00 : f32
    %48 = vector.broadcast %cst_25 : f32 to vector<1x128xf32>
    %49 = arith.divf %47, %48 : vector<1x128xf32>
    %cst_26 = arith.constant 9.99999974E-6 : f32
    %50 = vector.broadcast %cst_26 : f32 to vector<1x128xf32>
    %51 = arith.addf %49, %50 : vector<1x128xf32>
    %52 = math.rsqrt %51 : vector<1x128xf32>
    %53 = vector.extract_strided_slice %38 {offsets = [0, 0], sizes = [1, 128], strides = [1, 1]} : vector<2x128xf32> to vector<1x128xf32>
    %54 = arith.mulf %52, %53 : vector<1x128xf32>
    %55 = vector.broadcast %54 : vector<1x128xf32> to vector<8x128xf32>
    %56 = arith.mulf %44, %55 : vector<8x128xf32>
    %57 = vector.extract_strided_slice %38 {offsets = [1, 0], sizes = [1, 128], strides = [1, 1]} : vector<2x128xf32> to vector<1x128xf32>
    %58 = vector.broadcast %57 : vector<1x128xf32> to vector<8x128xf32>
    %59 = arith.addf %56, %58 : vector<8x128xf32>
    %cst_27 = arith.constant 0.000000e+00 : f32
    %60 = vector.broadcast %cst_27 : f32 to vector<8x128xf32>
    %61 = arith.maximumf %59, %60 : vector<8x128xf32>
    %c1_28 = arith.constant 1 : index
    %c0_29 = arith.constant 0 : index
    %c0_30 = arith.constant 0 : index
    %62 = vector.load %arg3[%c1_28, %c0_29, %c0_30] : memref<5x8x128xf32, #tpu.memory_space<vmem>>, vector<1x8x128xf32>
    %63 = vector.shape_cast %62 : vector<1x8x128xf32> to vector<8x128xf32>
    %64 = vector.shape_cast %61 : vector<8x128xf32> to vector<1x8x128xf32>
    tpu.vector_store %arg3[%c1_28, %c0_29, %c0_30], %64 {strides = array<i32>} : memref<5x8x128xf32, #tpu.memory_space<vmem>>, vector<1x8x128xf32>,
    %c2 = arith.constant 2 : index
    %c0_31 = arith.constant 0 : index
    %c0_32 = arith.constant 0 : index
    %65 = vector.load %arg1[%c2, %c0_31, %c0_32] : memref<5x128x128xbf16, #tpu.memory_space<vmem>>, vector<1x128x128xbf16>
    %66 = vector.shape_cast %65 : vector<1x128x128xbf16> to vector<128x128xbf16>
    %67 = arith.truncf %61 : vector<8x128xf32> to vector<8x128xbf16>
    %cst_33 = arith.constant dense<0.000000e+00> : vector<8x128xf32>
    %68 = tpu.matmul %67, %66, %cst_33 {dimension_numbers = #tpu.dot_dimension_numbers<[1], [0], [0], [1], [0, 0, 1, 1], [], []>} : vector<8x128xbf16>, vector<128x128xbf16>, vector<8x128xf32> -> vector<8x128xf32>
    %c2_34 = arith.constant 2 : index
    %c0_35 = arith.constant 0 : index
    %c0_36 = arith.constant 0 : index
    %69 = vector.load %arg3[%c2_34, %c0_35, %c0_36] : memref<5x8x128xf32, #tpu.memory_space<vmem>>, vector<1x8x128xf32>
    %70 = vector.shape_cast %69 : vector<1x8x128xf32> to vector<8x128xf32>
    %71 = vector.shape_cast %68 : vector<8x128xf32> to vector<1x8x128xf32>
    tpu.vector_store %arg3[%c2_34, %c0_35, %c0_36], %71 {strides = array<i32>} : memref<5x8x128xf32, #tpu.memory_space<vmem>>, vector<1x8x128xf32>,
    %c3 = arith.constant 3 : index
    %c0_37 = arith.constant 0 : index
    %c0_38 = arith.constant 0 : index
    %72 = vector.load %arg1[%c3, %c0_37, %c0_38] : memref<5x128x128xbf16, #tpu.memory_space<vmem>>, vector<1x128x128xbf16>
    %73 = vector.shape_cast %72 : vector<1x128x128xbf16> to vector<128x128xbf16>
    %74 = arith.truncf %68 : vector<8x128xf32> to vector<8x128xbf16>
    %cst_39 = arith.constant dense<0.000000e+00> : vector<8x128xf32>
    %75 = tpu.matmul %74, %73, %cst_39 {dimension_numbers = #tpu.dot_dimension_numbers<[1], [0], [0], [1], [0, 0, 1, 1], [], []>} : vector<8x128xbf16>, vector<128x128xbf16>, vector<8x128xf32> -> vector<8x128xf32>
    %c3_40 = arith.constant 3 : index
    %c0_41 = arith.constant 0 : index
    %c0_42 = arith.constant 0 : index
    %76 = vector.load %arg3[%c3_40, %c0_41, %c0_42] : memref<5x8x128xf32, #tpu.memory_space<vmem>>, vector<1x8x128xf32>
    %77 = vector.shape_cast %76 : vector<1x8x128xf32> to vector<8x128xf32>
    %78 = vector.shape_cast %75 : vector<8x128xf32> to vector<1x8x128xf32>
    tpu.vector_store %arg3[%c3_40, %c0_41, %c0_42], %78 {strides = array<i32>} : memref<5x8x128xf32, #tpu.memory_space<vmem>>, vector<1x8x128xf32>,
    %c4 = arith.constant 4 : index
    %c0_43 = arith.constant 0 : index
    %c0_44 = arith.constant 0 : index
    %79 = vector.load %arg1[%c4, %c0_43, %c0_44] : memref<5x128x128xbf16, #tpu.memory_space<vmem>>, vector<1x128x128xbf16>
    %80 = vector.shape_cast %79 : vector<1x128x128xbf16> to vector<128x128xbf16>
    %81 = arith.truncf %75 : vector<8x128xf32> to vector<8x128xbf16>
    %cst_45 = arith.constant dense<0.000000e+00> : vector<8x128xf32>
    %82 = tpu.matmul %81, %80, %cst_45 {dimension_numbers = #tpu.dot_dimension_numbers<[1], [0], [0], [1], [0, 0, 1, 1], [], []>} : vector<8x128xbf16>, vector<128x128xbf16>, vector<8x128xf32> -> vector<8x128xf32>
    %c4_46 = arith.constant 4 : index
    %c0_47 = arith.constant 0 : index
    %c0_48 = arith.constant 0 : index
    %83 = vector.load %arg3[%c4_46, %c0_47, %c0_48] : memref<5x8x128xf32, #tpu.memory_space<vmem>>, vector<1x8x128xf32>
    %84 = vector.shape_cast %83 : vector<1x8x128xf32> to vector<8x128xf32>
    %85 = vector.shape_cast %82 : vector<8x128xf32> to vector<1x8x128xf32>
    tpu.vector_store %arg3[%c4_46, %c0_47, %c0_48], %85 {strides = array<i32>} : memref<5x8x128xf32, #tpu.memory_space<vmem>>, vector<1x8x128xf32>,
    return
  }
}

</mosaic_0001>

<bundles_post_ra>
// kernel: tunnel_network_forward.1
= control target key start
LH: loop header
LB: loop body
LE: loop exit
PB: predicated region body
PF: predicated region fallthrough
CT: control target
= control target key end

     0   :  { %8 = vsyncpa [#allocation3], 0  ;;  %s900_s12 = smov [#allocation2]   ;;  %s1023_s0 = inlined_call_operand.vmem [shape: f32[8,128], index: 0, kind: input, shape index: {}]   ;;  %s1024_s1 = inlined_call_operand.hbm [shape: bf16[5,128,128], index: 1, kind: input, shape index: {}]   ;;  %s1025_s2 = inlined_call_operand.vmem [shape: f32[5,2,128], index: 2, kind: input, shape index: {}]   ;;  %s1026_s3 = inlined_call_operand.vmem [shape: f32[5,8,128], index: 3, kind: output, shape index: {}]  }
   0x1   :  { %s16_s13 = sshll.u32 %s900_s12, 4  ;;  %s876_s16 = scalar_lea.hbm %s1024_s1, 5120  ;;  %s17_s13 = int_to_ptr.vmem [resolvable:$true] %s16_s13 }
   0x2   :  { %p877_p0 = scmp.ne.s32.totalorder %s1024_s1, %s876_s16  ;;  %p880_p1 = scmp.lt.u32.totalorder %s876_s16, %s1024_s1 }
   0x4   :  { %p882_p2 = pnand %p880_p1, %p877_p0 }
   0x6   :  { %885 = shalt.err (!%p882_p2)
}
   0x7   :  { %s886_s21 = scalar_lea.vmem %s17_s13, 5120  ;;  %p891_p4 = scmp.lt.s32.totalorder %s17_s13, %s17_s13 }
   0x8   :  { %p887_p3 = scmp.ne.s32.totalorder %s17_s13, %s886_s21  ;;  %p892_p5 = scmp.lt.s32.totalorder %s886_s21, %s886_s21 }
   0xa   :  { %p893_p6 = por %p892_p5, %p891_p4 }
   0xc   :  { %p894_p7 = pnand %p893_p6, %p887_p3 }
   0xe   :  { %897 = shalt.err (!%p894_p7)
}
   0xf   :  { %s901_s22 = smov 64   ;;  %s902_s23 = smov 4  }
  0x10   :  { %22 = dma.hbm_to_vmem [thread:$0]  %s1024_s1, 5120, %s17_s13, [#allocation3], %s901_s22, %s901_s22, %s902_s23  }
  0x11   :  { %898 = dma.done.wait [#allocation3], 5120  }
  0x12   :  { %899 = vsyncadd [#allocation3], 4294962176  ;;  %v903_v0 = vmov 0.0   ;;  %vm904_vm0 = vmmov 0   ;;  %v832_v1 = vld [vmem:[#allocation2] sm:$0xff]   ;;  %v833_v2 = vld [vmem:[#allocation2 + $0x8] sm:$0xff]   ;;  %v156_v40 = vlaneseq }
  0x13   :  { %727 = vmatprep.subr.bf16.mxu0 %v903_v0  ;;  %743 = vmatprep.mubr.msk.bf16.mxu0 %vm904_vm0, %v903_v0  ;;  %v834_v3 = vld [vmem:[#allocation2 + $0x10] sm:$0xff]   ;;  %v835_v4 = vld [vmem:[#allocation2 + $0x18] sm:$0xff]   ;;  %v836_v5 = vld [vmem:[#allocation2 + $0x20] sm:$0xff]  }
  0x14   :  { %747 = vmatprep.subr.bf16.mxu1 %v903_v0  ;;  %763 = vmatprep.mubr.msk.bf16.mxu1 %vm904_vm0, %v903_v0  ;;  %v837_v6 = vld [vmem:[#allocation2 + $0x28] sm:$0xff]   ;;  %v838_v7 = vld [vmem:[#allocation2 + $0x30] sm:$0xff]   ;;  %v839_v8 = vld [vmem:[#allocation2 + $0x38] sm:$0xff]   ;;  %v964_v41 = vshrl.u32 %v156_v40, 7 }
  0x15   :  { %728 = vmatpush3.bf16.msra.mxu0 %v832_v1  ;;  %v29_v9 = vld [vmem:[%s1023_s0] sm:$0xff]  ;;  %v841_v12 = vld [vmem:[#allocation2 + $0x48] sm:$0xff]   ;;  %v842_v13 = vld [vmem:[#allocation2 + $0x50] sm:$0xff]  }
  0x16   :  { %729 = vmatprep.subr.bf16.mxu0 %v903_v0  ;;  %v46_v10 = vpack.c.bf16 %v29_v9, %v29_v9  ;;  %v840_v11 = vld [vmem:[#allocation2 + $0x40] sm:$0xff]   ;;  %v843_v14 = vld [vmem:[#allocation2 + $0x58] sm:$0xff]   ;;  %v845_v16 = vld [vmem:[#allocation2 + $0x68] sm:$0xff]   ;;  %v158_v43 = vsub.s32 0, %v964_v41  ;;  %v163_v44 = vsub.s32 1, %v964_v41 }
  0x17   :  { %748 = vmatpush3.bf16.msra.mxu1 %v840_v11  ;;  %v844_v15 = vld [vmem:[#allocation2 + $0x60] sm:$0xff]   ;;  %v846_v17 = vld [vmem:[#allocation2 + $0x70] sm:$0xff]   ;;  %v847_v18 = vld [vmem:[#allocation2 + $0x78] sm:$0xff]  }
  0x18   :  { %749 = vmatprep.subr.bf16.mxu1 %v903_v0  ;;  %v135_v42 = vld [vmem:[%s1025_s2] sm:$0x3]  ;;  %v849_v54 = vld [vmem:[#allocation2 + $0x88] sm:$0xff]   ;;  %v850_v55 = vld [vmem:[#allocation2 + $0x90] sm:$0xff]  }
  0x19   :  { %730 = vmatpush3.bf16.msra.mxu0 %v833_v2  ;;  %v164_v48 = vrot.slane %v135_v42, %v163_v44  ;;  %v848_v53 = vld [vmem:[#allocation2 + $0x80] sm:$0xff]   ;;  %v851_v56 = vld [vmem:[#allocation2 + $0x98] sm:$0xff]   ;;  %v853_v58 = vld [vmem:[#allocation2 + $0xa8] sm:$0xff]  }
  0x1a   :  { %731 = vmatprep.subr.bf16.mxu0 %v903_v0  ;;  %v852_v57 = vld [vmem:[#allocation2 + $0xa0] sm:$0xff]   ;;  %v854_v59 = vld [vmem:[#allocation2 + $0xb0] sm:$0xff]   ;;  %v855_v60 = vld [vmem:[#allocation2 + $0xb8] sm:$0xff]  }
  0x1b   :  { %750 = vmatpush3.bf16.msra.mxu1 %v841_v12  ;;  %v856_v61 = vld [vmem:[#allocation2 + $0xc0] sm:$0xff]   ;;  %v857_v62 = vld [vmem:[#allocation2 + $0xc8] sm:$0xff]   ;;  %v858_v63 = vld [vmem:[#allocation2 + $0xd0] sm:$0xff]  }
  0x1c   :  { %751 = vmatprep.subr.bf16.mxu1 %v903_v0  ;;  %v859_v1 = vld [vmem:[#allocation2 + $0xd8] sm:$0xff]   ;;  %v860_v2 = vld [vmem:[#allocation2 + $0xe0] sm:$0xff]   ;;  %v869_v41 = vld [vmem:[#allocation2 + $0x128] sm:$0xff]  }
  0x1d   :  { %732 = vmatpush3.bf16.msra.mxu0 %v834_v3  ;;  %v861_v3 = vld [vmem:[#allocation2 + $0xe8] sm:$0xff]   ;;  %v868_v40 = vld [vmem:[#allocation2 + $0x120] sm:$0xff]  }
  0x1e   :  { %733 = vmatprep.subr.bf16.mxu0 %v903_v0 }
  0x1f   :  { %752 = vmatpush3.bf16.msra.mxu1 %v842_v13 }
  0x20   :  { %753 = vmatprep.subr.bf16.mxu1 %v903_v0 }
  0x21   :  { %734 = vmatpush3.bf16.msra.mxu0 %v835_v4  ;;  %v862_v4 = vld [vmem:[#allocation2 + $0xf0] sm:$0xff]  }
  0x22   :  { %735 = vmatprep.subr.bf16.mxu0 %v903_v0 }
  0x23   :  { %754 = vmatpush3.bf16.msra.mxu1 %v843_v14 }
  0x24   :  { %755 = vmatprep.subr.bf16.mxu1 %v903_v0 }
  0x25   :  { %736 = vmatpush3.bf16.msra.mxu0 %v836_v5 }
  0x26   :  { %737 = vmatprep.subr.bf16.mxu0 %v903_v0 }
  0x27   :  { %756 = vmatpush3.bf16.msra.mxu1 %v844_v15 }
  0x28   :  { %757 = vmatprep.subr.bf16.mxu1 %v903_v0 }
  0x29   :  { %738 = vmatpush3.bf16.msra.mxu0 %v837_v6 }
  0x2a   :  { %739 = vmatprep.subr.bf16.mxu0 %v903_v0 }
  0x2b   :  { %758 = vmatpush3.bf16.msra.mxu1 %v845_v16 }
  0x2c   :  { %759 = vmatprep.subr.bf16.mxu1 %v903_v0 }
  0x2d   :  { %740 = vmatpush3.bf16.msra.mxu0 %v838_v7 }
  0x2e   :  { %741 = vmatprep.subr.bf16.mxu0 %v903_v0 }
  0x2f   :  { %760 = vmatpush3.bf16.msra.mxu1 %v846_v17 }
  0x30   :  { %761 = vmatprep.subr.bf16.mxu1 %v903_v0 }
  0x31   :  { %742 = vmatpush3.bf16.msra.mxu0 %v839_v8 }
  0x32   :  { %767 = vmatprep.subr.bf16.mxu0 %v903_v0 }
  0x33   :  { %762 = vmatpush3.bf16.msra.mxu1 %v847_v18 }
  0x34   :  { %744 = vmatmul.mubr.bf16.vlgmr.msra.gmra.mrb[0].mxu0 %v46_v10  ;;  %787 = vmatprep.subr.bf16.mxu1 %v903_v0 }
  0x35   :  { %783 = vmatprep.mubr.msk.bf16.mxu0 %vm904_vm0, %v903_v0  ;;  %768 = vmatpush3.bf16.msra.mxu0 %v848_v53 }
  0x36   :  { %769 = vmatprep.subr.bf16.mxu0 %v903_v0 }
  0x39   :  { %770 = vmatpush3.bf16.msra.mxu0 %v849_v54 }
  0x3a   :  { %771 = vmatprep.subr.bf16.mxu0 %v903_v0 }
  0x3d   :  { %772 = vmatpush3.bf16.msra.mxu0 %v850_v55 }
  0x3e   :  { %773 = vmatprep.subr.bf16.mxu0 %v903_v0 }
  0x41   :  { %774 = vmatpush3.bf16.msra.mxu0 %v851_v56 }
  0x42   :  { %775 = vmatprep.subr.bf16.mxu0 %v903_v0 }
  0x45   :  { %776 = vmatpush3.bf16.msra.mxu0 %v852_v57 }
  0x46   :  { %777 = vmatprep.subr.bf16.mxu0 %v903_v0 }
  0x49   :  { %778 = vmatpush3.bf16.msra.mxu0 %v853_v58 }
  0x4a   :  { %779 = vmatprep.subr.bf16.mxu0 %v903_v0 }
  0x4d   :  { %780 = vmatpush3.bf16.msra.mxu0 %v854_v59 }
  0x4e   :  { %781 = vmatprep.subr.bf16.mxu0 %v903_v0 }
  0x51   :  { %782 = vmatpush3.bf16.msra.mxu0 %v855_v60 }
  0x52   :  { %807 = vmatprep.subr.bf16.mxu0 %v903_v0 }
 0x107   :  { %v129_v19 = vpop.f32.mrb[0].mxu0 }
 0x108   :  { %v136_v20 = vrot.slane %v129_v19, 4  ;;  %v745_v21 = vpop.f32.mrb[1].mxu0 }
 0x109   :  { %v132_v22 = vpop.f32.mrb[2].mxu0 }
 0x10a   :  { %v137_v23 = vadd.f32 %v136_v20, %v129_v19  ;;  %v746_v24 = vpop.f32.mrb[3].mxu0 }
 0x10c   :  { %v138_v25 = vrot.slane %v137_v23, 2 }
 0x10e   :  { %v139_v26 = vadd.f32 %v138_v25, %v137_v23 }
 0x110   :  { %v140_v27 = vrot.slane %v139_v26, 1 }
 0x112   :  { %v141_v28 = vadd.f32 %v140_v27, %v139_v26  ;;  %v653_v26 = vld [vmem:[%s1025_s2 + $0x2] sm:$0x3] }
 0x114   :  { %v143_v29 = vmul.f32 0.125, %v141_v28 }
 0x116   :  { %v144_v30 = vsub.f32 %v129_v19, %v143_v29 }
 0x118   :  { %v145_v31 = vmul.f32 %v144_v30, %v144_v30 }
 0x11a   :  { %v146_v32 = vrot.slane %v145_v31, 4 }
 0x11c   :  { %v147_v33 = vadd.f32 %v146_v32, %v145_v31 }
 0x11e   :  { %v148_v34 = vrot.slane %v147_v33, 2 }
 0x120   :  { %v149_v35 = vadd.f32 %v148_v34, %v147_v33 }
 0x122   :  { %v150_v36 = vrot.slane %v149_v35, 1 }
 0x124   :  { %v151_v37 = vadd.f32 %v150_v36, %v149_v35  ;;  %v863_v35 = vld [vmem:[#allocation2 + $0xf8] sm:$0xff]   ;;  %v864_v36 = vld [vmem:[#allocation2 + $0x100] sm:$0xff]  }
 0x126   :  { %v152_v38 = vmul.f32 0.125, %v151_v37  ;;  %v865_v37 = vld [vmem:[#allocation2 + $0x108] sm:$0xff]  }
 0x128   :  { %v153_v39 = vadd.f32 1e-05, %v152_v38  ;;  %v866_v38 = vld [vmem:[#allocation2 + $0x110] sm:$0xff]  }
 0x12a   :  { %872 = vrsqrt.f32 %v153_v39  ;;  %v867_v39 = vld [vmem:[#allocation2 + $0x118] sm:$0xff]  }
 0x134   :  { %v873_v45 = vpop.eup %872 }
 0x135   :  { %v155_v46 = vmul.f32 %v873_v45, %v135_v42  ;;  %v870_v42 = vld [vmem:[#allocation2 + $0x130] sm:$0xff]  }
 0x137   :  { %v159_v47 = vrot.slane %v155_v46, %v158_v43 }
 0x139   :  { %v160_v49 = vmul.f32 %v159_v47, %v144_v30  ;;  %v303_v30 = vrot.slane %v653_v26, %v163_v44 }
 0x13b   :  { %v165_v50 = vadd.f32 %v164_v48, %v160_v49  ;;  %v871_v48 = vld [vmem:[#allocation2 + $0x138] sm:$0xff]  }
 0x13d   :  { %v166_v51 = vmax.f32 %v165_v50, 0.0 }
 0x13f   :  { %167 = vst [vmem:[%s1026_s3] sm:$0xff] %v166_v51  ;;  %v185_v52 = vpack.c.bf16 %v166_v51, %v166_v51 }
 0x141   :  { %764 = vmatmul.mubr.bf16.vlgmr.msra.gmra.mrb[0].mxu1 %v185_v52 }
 0x142   :  { %803 = vmatprep.mubr.msk.bf16.mxu1 %vm904_vm0, %v903_v0  ;;  %788 = vmatpush3.bf16.msra.mxu1 %v856_v61 }
 0x143   :  { %789 = vmatprep.subr.bf16.mxu1 %v903_v0 }
 0x146   :  { %790 = vmatpush3.bf16.msra.mxu1 %v857_v62 }
 0x147   :  { %791 = vmatprep.subr.bf16.mxu1 %v903_v0 }
 0x14a   :  { %792 = vmatpush3.bf16.msra.mxu1 %v858_v63 }
 0x14b   :  { %793 = vmatprep.subr.bf16.mxu1 %v903_v0 }
 0x14e   :  { %794 = vmatpush3.bf16.msra.mxu1 %v859_v1 }
 0x14f   :  { %795 = vmatprep.subr.bf16.mxu1 %v903_v0 }
 0x152   :  { %796 = vmatpush3.bf16.msra.mxu1 %v860_v2 }
 0x153   :  { %797 = vmatprep.subr.bf16.mxu1 %v903_v0 }
 0x156   :  { %798 = vmatpush3.bf16.msra.mxu1 %v861_v3 }
 0x157   :  { %799 = vmatprep.subr.bf16.mxu1 %v903_v0 }
 0x15a   :  { %800 = vmatpush3.bf16.msra.mxu1 %v862_v4 }
 0x15b   :  { %801 = vmatprep.subr.bf16.mxu1 %v903_v0 }
 0x15e   :  { %802 = vmatpush3.bf16.msra.mxu1 %v863_v35 }
 0x214   :  { %v268_v5 = vpop.f32.mrb[0].mxu1 }
 0x215   :  { %v276_v6 = vrot.slane %v268_v5, 4  ;;  %v765_v7 = vpop.f32.mrb[1].mxu1 }
 0x216   :  { %v271_v8 = vpop.f32.mrb[2].mxu1 }
 0x217   :  { %v277_v9 = vadd.f32 %v276_v6, %v268_v5  ;;  %v766_v10 = vpop.f32.mrb[3].mxu1 }
 0x219   :  { %v278_v11 = vrot.slane %v277_v9, 2 }
 0x21b   :  { %v279_v12 = vadd.f32 %v278_v11, %v277_v9 }
 0x21d   :  { %v280_v13 = vrot.slane %v279_v12, 1 }
 0x21f   :  { %v281_v14 = vadd.f32 %v280_v13, %v279_v12 }
 0x221   :  { %v282_v15 = vmul.f32 0.125, %v281_v14 }
 0x223   :  { %v283_v16 = vsub.f32 %v268_v5, %v282_v15 }
 0x225   :  { %v284_v17 = vmul.f32 %v283_v16, %v283_v16 }
 0x227   :  { %v285_v18 = vrot.slane %v284_v17, 4 }
 0x229   :  { %v286_v19 = vadd.f32 %v285_v18, %v284_v17 }
 0x22b   :  { %v287_v20 = vrot.slane %v286_v19, 2 }
 0x22d   :  { %v288_v21 = vadd.f32 %v287_v20, %v286_v19 }
 0x22f   :  { %v289_v22 = vrot.slane %v288_v21, 1 }
 0x231   :  { %v290_v23 = vadd.f32 %v289_v22, %v288_v21 }
 0x233   :  { %v291_v24 = vmul.f32 0.125, %v290_v23 }
 0x235   :  { %v292_v25 = vadd.f32 1e-05, %v291_v24 }
 0x237   :  { %874 = vrsqrt.f32 %v292_v25 }
 0x241   :  { %v875_v27 = vpop.eup %874 }
 0x242   :  { %v294_v28 = vmul.f32 %v875_v27, %v653_v26 }
 0x244   :  { %v298_v29 = vrot.slane %v294_v28, %v158_v43 }
 0x246   :  { %v299_v31 = vmul.f32 %v298_v29, %v283_v16 }
 0x248   :  { %v304_v32 = vadd.f32 %v303_v30, %v299_v31 }
 0x24a   :  { %v305_v33 = vmax.f32 %v304_v32, 0.0 }
 0x24c   :  { %654 = vst [vmem:[%s1026_s3 + $0x8] sm:$0xff] %v305_v33  ;;  %v325_v34 = vpack.c.bf16 %v305_v33, %v305_v33 }
 0x24e   :  { %784 = vmatmul.mubr.bf16.vlgmr.msra.gmra.mrb[4].mxu0 %v325_v34 }
 0x24f   :  { %823 = vmatprep.mubr.msk.bf16.mxu0 %vm904_vm0, %v903_v0  ;;  %808 = vmatpush3.bf16.msra.mxu0 %v864_v36 }
 0x250   :  { %809 = vmatprep.subr.bf16.mxu0 %v903_v0 }
 0x253   :  { %810 = vmatpush3.bf16.msra.mxu0 %v865_v37 }
 0x254   :  { %811 = vmatprep.subr.bf16.mxu0 %v903_v0 }
 0x257   :  { %812 = vmatpush3.bf16.msra.mxu0 %v866_v38 }
 0x258   :  { %813 = vmatprep.subr.bf16.mxu0 %v903_v0 }
 0x25b   :  { %814 = vmatpush3.bf16.msra.mxu0 %v867_v39 }
 0x25c   :  { %815 = vmatprep.subr.bf16.mxu0 %v903_v0 }
 0x25f   :  { %816 = vmatpush3.bf16.msra.mxu0 %v868_v40 }
 0x260   :  { %817 = vmatprep.subr.bf16.mxu0 %v903_v0 }
 0x263   :  { %818 = vmatpush3.bf16.msra.mxu0 %v869_v41 }
 0x264   :  { %819 = vmatprep.subr.bf16.mxu0 %v903_v0 }
 0x267   :  { %820 = vmatpush3.bf16.msra.mxu0 %v870_v42 }
 0x268   :  { %821 = vmatprep.subr.bf16.mxu0 %v903_v0 }
 0x26b   :  { %822 = vmatpush3.bf16.msra.mxu0 %v871_v48 }
 0x321   :  { %v408_v43 = vpop.f32.mrb[4].mxu0 }
 0x322   :  { %663 = vst [vmem:[%s1026_s3 + $0x10] sm:$0xff] %v408_v43  ;;  %v433_v44 = vpack.c.bf16 %v408_v43, %v408_v43  ;;  %v785_v45 = vpop.f32.mrb[5].mxu0 }
 0x323   :  { %v411_v46 = vpop.f32.mrb[6].mxu0 }
 0x324   :  { %v786_v47 = vpop.f32.mrb[7].mxu0  ;;  %804 = vmatmul.mubr.bf16.vlgmr.msra.gmra.mrb[4].mxu1 %v433_v44 }
 0x3f7   :  { %v516_v49 = vpop.f32.mrb[4].mxu1 }
 0x3f8   :  { %672 = vst [vmem:[%s1026_s3 + $0x18] sm:$0xff] %v516_v49  ;;  %v541_v50 = vpack.c.bf16 %v516_v49, %v516_v49  ;;  %v805_v51 = vpop.f32.mrb[5].mxu1 }
 0x3f9   :  { %v519_v0 = vpop.f32.mrb[6].mxu1 }
 0x3fa   :  { %v806_v52 = vpop.f32.mrb[7].mxu1  ;;  %824 = vmatmul.mubr.bf16.vlgmr.msra.gmra.mrb[8].mxu0 %v541_v50 }
 0x4cd   :  { %v624_v53 = vpop.f32.mrb[8].mxu0 }
 0x4ce   :  { %681 = vst [vmem:[%s1026_s3 + $0x20] sm:$0xff] %v624_v53  ;;  %v825_v54 = vpop.f32.mrb[9].mxu0 }
 0x4cf   :  { %v627_v55 = vpop.f32.mrb[10].mxu0 }
 0x4d0   :  { %v826_v56 = vpop.f32.mrb[11].mxu0 }
 0x4d1   :  { %636 = vsyncpa [#allocation3], 1 }

</bundles_post_ra>
